<compile_context>
chip_gen: v7x
topology: tpu7x:2x2x1
jax: 0.10.0
libtpu: 0.0.40
codegen_flags: <defaults>
</compile_context>

<pallas_src>
import functools

import jax
import jax.numpy as jnp
from jax.experimental import pallas as pl
from jax.experimental.pallas import tpu as pltpu


def _round_up(x, m):
    return (x + m - 1) // m * m


def _cdiv(a, b):
    return -(-a // b)


# --------------------------------------------------------------------------- #
# Kernel
# --------------------------------------------------------------------------- #
def dqn_mlp_kernel(x_ref, w_ref, b_ref, o_ref, *, d_in_p, out_size, apply_softmax):
    """One batch tile: 4x (matmul + bias), ReLU on the first 3, masked softmax.

    x_ref: (TB, d_in_p) f32        w_ref: (4, Fp, Fp) bf16 (VMEM-resident)
    b_ref: (4, Fp)      f32        o_ref: (TB, Fp)    out_dtype (lane-dense)
    """
    # Cast activations to bf16 only at the MXU inputs; accumulate in f32.
    x = x_ref[...].astype(jnp.bfloat16)          # (TB, d_in_p)
    b = b_ref[...]                               # (4, Fp) f32

    # Layer 1: only the first d_in_p rows of the padded W1 slab are real
    # (rows beyond d_in and the padded x columns are both zero).
    h = jnp.dot(x, w_ref[0, :d_in_p, :], preferred_element_type=jnp.float32) + b[0:1, :]
    h = jnp.maximum(h, 0.0)

    # Layers 2/3: padded (Fp, Fp) weights; zero weight/bias padding keeps the
    # padded lanes at exactly 0 through the ReLUs, so the extra MXU columns
    # are semantically inert.  (Relies on pack_params zero-padding.)
    h = jnp.maximum(
        jnp.dot(h.astype(jnp.bfloat16), w_ref[1],
                preferred_element_type=jnp.float32) + b[1:2, :], 0.0)
    h = jnp.maximum(
        jnp.dot(h.astype(jnp.bfloat16), w_ref[2],
                preferred_element_type=jnp.float32) + b[2:3, :], 0.0)

    logits = jnp.dot(h.astype(jnp.bfloat16), w_ref[3],
                     preferred_element_type=jnp.float32) + b[3:4, :]

    if not apply_softmax:
        # Greedy-act() path: return raw logits (padded lanes are exactly 0,
        # the wrapper slices [:, :out_size] anyway).
        o_ref[...] = logits.astype(o_ref.dtype)
        return

    # Numerically stable softmax over the real `out_size` lanes only; padded
    # lanes get exactly 0 probability so the lane-dense output slab is valid.
    col = jax.lax.broadcasted_iota(jnp.int32, logits.shape, 1)
    logits = jnp.where(col < out_size, logits, jnp.float32(-1e30))
    m = jnp.max(logits, axis=-1, keepdims=True)
    e = jnp.exp(logits - m)
    denom = jnp.sum(e, axis=-1, keepdims=True)
    # Exact divide: the EUP is nowhere near the bottleneck here and exact
    # probabilities (rows summing to 1) matter if actions are sampled.
    o_ref[...] = (e / denom).astype(o_ref.dtype)


# --------------------------------------------------------------------------- #
# Packing (done ONCE per weight update, outside the per-call path)
# --------------------------------------------------------------------------- #
def pack_params(params):
    """Pack 4 (in, out) weights + biases into two zero-padded slabs.

    Weights -> one bf16 (4, Fp, Fp) slab, biases -> one f32 (4, Fp) slab.
    One big DMA per slab replaces 8 sub-4KiB descriptor-bound copies.
    NOTE: the padded weight columns / bias lanes MUST stay zero -- the kernel
    relies on ReLU(0 + 0) = 0 to keep padded lanes inert through layers 2/3.
    """
    ws = [params["w1"], params["w2"], params["w3"], params["w4"]]
    bs = [params["b1"], params["b2"], params["b3"], params["b4"]]
    dims = [ws[0].shape[0]] + [w.shape[1] for w in ws]
    fp = _round_up(max(dims), 128)               # lane-padded feature width
    w_slab = jnp.zeros((4, fp, fp), jnp.bfloat16)
    b_slab = jnp.zeros((4, fp), jnp.float32)
    for l, (w, b) in enumerate(zip(ws, bs)):
        w_slab = w_slab.at[l, : w.shape[0], : w.shape[1]].set(w.astype(jnp.bfloat16))
        b_slab = b_slab.at[l, : b.shape[-1]].set(b.reshape(-1).astype(jnp.float32))
    return w_slab, b_slab, fp


def _pick_batch_tile(batch, max_batch_tile):
    """Balanced batch tiles: minimal padding, and >=2 grid steps when the
    batch is big enough so both v7x TensorCores get work on the 'parallel'
    axis.  (On v5e/v6e the grid is a serial loop; the split costs ~0.35 us.)"""
    bp8 = _round_up(batch, 8)
    n_tiles = max(1, _cdiv(bp8, max_batch_tile))
    if n_tiles < 2 and bp8 >= 512:               # big enough to be worth splitting
        n_tiles = 2
    tb = _round_up(_cdiv(bp8, n_tiles), 8)
    bp = _round_up(bp8, tb)
    return tb, bp


# --------------------------------------------------------------------------- #
# Forward wrapper
# --------------------------------------------------------------------------- #
def _dqn_forward_impl(x, w_slab, b_slab, *, d_in, d_in_p, out_size, fp,
                      apply_softmax, max_batch_tile, out_dtype):
    assert x.shape[1] == d_in
    batch = x.shape[0]
    tb, bp = _pick_batch_tile(batch, max_batch_tile)

    x_p = jnp.pad(x.astype(jnp.float32), ((0, bp - batch), (0, d_in_p - d_in)))

    kernel = functools.partial(dqn_mlp_kernel, d_in_p=d_in_p,
                               out_size=out_size, apply_softmax=apply_softmax)

    out_bytes = bp * fp * jnp.dtype(out_dtype).itemsize
    cost = pl.CostEstimate(
        flops=2 * bp * (d_in_p + 3 * fp) * fp,
        transcendentals=bp * fp if apply_softmax else 0,
        bytes_accessed=x_p.size * 4 + w_slab.size * 2 + b_slab.size * 4 + out_bytes,
    )

    out_padded = pl.pallas_call(
        kernel,
        out_shape=jax.ShapeDtypeStruct((bp, fp), out_dtype),
        grid=(bp // tb,),
        in_specs=[
            # x: pipelined per batch tile.
            pl.BlockSpec((tb, d_in_p), lambda i: (i, 0)),
            # weights/biases: constant block index -> VMEM-resident, single buffer.
            pl.BlockSpec((4, fp, fp), lambda i: (0, 0, 0),
                         pipeline_mode=pl.Buffered(1)),
            pl.BlockSpec((4, fp), lambda i: (0, 0),
                         pipeline_mode=pl.Buffered(1)),
        ],
        out_specs=pl.BlockSpec((tb, fp), lambda i: (i, 0)),   # lane-dense slab
        compiler_params=pltpu.CompilerParams(
            dimension_semantics=("parallel",),                # shard tiles across TCs (v7x)
        ),
        cost_estimate=cost,
    )(x_p, w_slab, b_slab)

    # NOTE: large-batch v5e consumers can read the padded (bp, Fp) slab
    # directly (or pass out_dtype=jnp.bfloat16) to avoid this extra slice.
    return out_padded[:batch, :out_size]


class DQNForward:
    """Packs the MLP weights once; __call__ runs the jitted Pallas forward."""

    def __init__(self, params, *, max_batch_tile=2048, apply_softmax=True,
                 out_dtype=jnp.float32):
        self.w_slab, self.b_slab, self.fp = pack_params(params)
        self.d_in = params["w1"].shape[0]
        self.d_in_p = _round_up(self.d_in, 16)   # bf16-friendly W1-row slice
        self.out_size = params["w4"].shape[1]
        self._fwd = jax.jit(functools.partial(
            _dqn_forward_impl,
            d_in=self.d_in, d_in_p=self.d_in_p, out_size=self.out_size,
            fp=self.fp, apply_softmax=apply_softmax,
            max_batch_tile=max_batch_tile, out_dtype=out_dtype))

    def __call__(self, x):
        return self._fwd(x, self.w_slab, self.b_slab)


# --------------------------------------------------------------------------- #
# Reference + init
# --------------------------------------------------------------------------- #
def init_params(key, input_size, first, second, third, output_size):
    """Deterministic synthetic init (uniform, like nn.Linear's default range)."""
    ks = jax.random.split(key, 8)

    def linear(kw, kb, fan_in, fan_out):
        bound = 1.0 / jnp.sqrt(fan_in)
        # stored as (in, out) so forward is x @ W + b
        w = jax.random.uniform(kw, (fan_in, fan_out), jnp.float32, -bound, bound)
        b = jax.random.uniform(kb, (1, fan_out), jnp.float32, -bound, bound)
        return w, b

    w1, b1 = linear(ks[0], ks[1], input_size, first)
    w2, b2 = linear(ks[2], ks[3], first, second)
    w3, b3 = linear(ks[4], ks[5], second, third)
    w4, b4 = linear(ks[6], ks[7], third, output_size)
    return {"w1": w1, "b1": b1, "w2": w2, "b2": b2,
            "w3": w3, "b3": b3, "w4": w4, "b4": b4}


def dqn_forward_ref(x, p):
    h = jax.nn.relu(x @ p["w1"] + p["b1"])
    h = jax.nn.relu(h @ p["w2"] + p["b2"])
    h = jax.nn.relu(h @ p["w3"] + p["b3"])
    return jax.nn.softmax(h @ p["w4"] + p["b4"], axis=-1)


if __name__ == "__main__":
    # Small shapes consistent with the module: state vector in, action dist out.
    batch = 8
    input_size = 16        # state_len
    first_layer = 32       # params['first_layer_size']
    second_layer = 32      # params['second_layer_size']
    third_layer = 32       # params['third_layer_size']
    output_size = 4        # action_len

    key = jax.random.PRNGKey(0)
    kx, kp = jax.random.split(key)
    x = jax.random.normal(kx, (batch, input_size), dtype=jnp.float32)
    params = init_params(kp, input_size, first_layer, second_layer,
                         third_layer, output_size)

    # Pack once, reuse across calls (per perf review).
    fwd = DQNForward(params)                      # softmax probabilities
    fwd_logits = DQNForward(params, apply_softmax=False)  # greedy-act() path

    out = jax.block_until_ready(fwd(x))
    out2 = jax.block_until_ready(fwd(x))          # cached slabs + compiled fn
    logits = jax.block_until_ready(fwd_logits(x))
    ref = dqn_forward_ref(x, params)

    assert out.shape == (batch, output_size)
    assert logits.shape == (batch, output_size)
    # bf16 weights / bf16 dot inputs -> loosened tolerance vs the f32 reference.
    assert jnp.allclose(out, ref, atol=2e-2, rtol=2e-2), "mismatch vs JAX reference"
    assert jnp.allclose(out, out2), "repeat call mismatch"
    # Exact softmax divide -> rows sum to 1 to f32 precision.
    assert jnp.allclose(jnp.sum(out, axis=-1), 1.0, atol=1e-5)
    # Logits path is consistent with the probability path.
    assert jnp.allclose(jax.nn.softmax(logits, axis=-1), out, atol=1e-5)

    print("KERNEL_OK")
</pallas_src>

<mosaic_0001>
module attributes {stable_mosaic.version = 11 : i64} {
  func.func @dqn_mlp_kernel(%arg0: i32, %arg1: memref<8x16xf32, #tpu.memory_space<vmem>>, %arg2: memref<4x128x128xbf16, #tpu.memory_space<vmem>>, %arg3: memref<4x128xf32, #tpu.memory_space<vmem>>, %arg4: memref<8x128xf32, #tpu.memory_space<vmem>>) attributes {dimension_semantics = [#tpu.dimension_semantics<parallel>], iteration_bounds = array<i64: 1>, scalar_prefetch = 0 : i64, scratch_operands = 0 : i64, tpu.core_type = #tpu.core_type<tc>, window_params = [{transform_indices = @transform_0, window_bounds = array<i64: 8, 16>}, {pipeline_mode = #tpu.pipeline_mode<synchronous>, transform_indices = @transform_1, window_bounds = array<i64: 4, 128, 128>}, {pipeline_mode = #tpu.pipeline_mode<synchronous>, transform_indices = @transform_2, window_bounds = array<i64: 4, 128>}, {transform_indices = @transform_3, window_bounds = array<i64: 8, 128>}]} {
    %c0 = arith.constant 0 : index
    %c0_0 = arith.constant 0 : index
    %0 = vector.load %arg1[%c0, %c0_0] : memref<8x16xf32, #tpu.memory_space<vmem>>, vector<8x16xf32>
    %1 = arith.truncf %0 : vector<8x16xf32> to vector<8x16xbf16>
    %c0_1 = arith.constant 0 : index
    %c0_2 = arith.constant 0 : index
    %2 = vector.load %arg3[%c0_1, %c0_2] : memref<4x128xf32, #tpu.memory_space<vmem>>, vector<4x128xf32>
    %c0_3 = arith.constant 0 : index
    %c0_4 = arith.constant 0 : index
    %c0_5 = arith.constant 0 : index
    %3 = vector.load %arg2[%c0_3, %c0_4, %c0_5] : memref<4x128x128xbf16, #tpu.memory_space<vmem>>, vector<1x16x128xbf16>
    %4 = vector.shape_cast %3 : vector<1x16x128xbf16> to vector<16x128xbf16>
    %cst = arith.constant dense<0.000000e+00> : vector<8x128xf32>
    %5 = tpu.matmul %1, %4, %cst {dimension_numbers = #tpu.dot_dimension_numbers<[1], [0], [0], [1], [0, 0, 1, 1], [], []>} : vector<8x16xbf16>, vector<16x128xbf16>, vector<8x128xf32> -> vector<8x128xf32>
    %6 = vector.extract_strided_slice %2 {offsets = [0, 0], sizes = [1, 128], strides = [1, 1]} : vector<4x128xf32> to vector<1x128xf32>
    %7 = vector.broadcast %6 : vector<1x128xf32> to vector<8x128xf32>
    %8 = arith.addf %5, %7 : vector<8x128xf32>
    %cst_6 = arith.constant 0.000000e+00 : f32
    %9 = vector.broadcast %cst_6 : f32 to vector<8x128xf32>
    %10 = arith.maximumf %8, %9 : vector<8x128xf32>
    %11 = arith.truncf %10 : vector<8x128xf32> to vector<8x128xbf16>
    %c1 = arith.constant 1 : index
    %c0_7 = arith.constant 0 : index
    %c0_8 = arith.constant 0 : index
    %12 = vector.load %arg2[%c1, %c0_7, %c0_8] : memref<4x128x128xbf16, #tpu.memory_space<vmem>>, vector<1x128x128xbf16>
    %13 = vector.shape_cast %12 : vector<1x128x128xbf16> to vector<128x128xbf16>
    %cst_9 = arith.constant dense<0.000000e+00> : vector<8x128xf32>
    %14 = tpu.matmul %11, %13, %cst_9 {dimension_numbers = #tpu.dot_dimension_numbers<[1], [0], [0], [1], [0, 0, 1, 1], [], []>} : vector<8x128xbf16>, vector<128x128xbf16>, vector<8x128xf32> -> vector<8x128xf32>
    %15 = vector.extract_strided_slice %2 {offsets = [1, 0], sizes = [1, 128], strides = [1, 1]} : vector<4x128xf32> to vector<1x128xf32>
    %16 = vector.broadcast %15 : vector<1x128xf32> to vector<8x128xf32>
    %17 = arith.addf %14, %16 : vector<8x128xf32>
    %cst_10 = arith.constant 0.000000e+00 : f32
    %18 = vector.broadcast %cst_10 : f32 to vector<8x128xf32>
    %19 = arith.maximumf %17, %18 : vector<8x128xf32>
    %20 = arith.truncf %19 : vector<8x128xf32> to vector<8x128xbf16>
    %c2 = arith.constant 2 : index
    %c0_11 = arith.constant 0 : index
    %c0_12 = arith.constant 0 : index
    %21 = vector.load %arg2[%c2, %c0_11, %c0_12] : memref<4x128x128xbf16, #tpu.memory_space<vmem>>, vector<1x128x128xbf16>
    %22 = vector.shape_cast %21 : vector<1x128x128xbf16> to vector<128x128xbf16>
    %cst_13 = arith.constant dense<0.000000e+00> : vector<8x128xf32>
    %23 = tpu.matmul %20, %22, %cst_13 {dimension_numbers = #tpu.dot_dimension_numbers<[1], [0], [0], [1], [0, 0, 1, 1], [], []>} : vector<8x128xbf16>, vector<128x128xbf16>, vector<8x128xf32> -> vector<8x128xf32>
    %24 = vector.extract_strided_slice %2 {offsets = [2, 0], sizes = [1, 128], strides = [1, 1]} : vector<4x128xf32> to vector<1x128xf32>
    %25 = vector.broadcast %24 : vector<1x128xf32> to vector<8x128xf32>
    %26 = arith.addf %23, %25 : vector<8x128xf32>
    %cst_14 = arith.constant 0.000000e+00 : f32
    %27 = vector.broadcast %cst_14 : f32 to vector<8x128xf32>
    %28 = arith.maximumf %26, %27 : vector<8x128xf32>
    %29 = arith.truncf %28 : vector<8x128xf32> to vector<8x128xbf16>
    %c3 = arith.constant 3 : index
    %c0_15 = arith.constant 0 : index
    %c0_16 = arith.constant 0 : index
    %30 = vector.load %arg2[%c3, %c0_15, %c0_16] : memref<4x128x128xbf16, #tpu.memory_space<vmem>>, vector<1x128x128xbf16>
    %31 = vector.shape_cast %30 : vector<1x128x128xbf16> to vector<128x128xbf16>
    %cst_17 = arith.constant dense<0.000000e+00> : vector<8x128xf32>
    %32 = tpu.matmul %29, %31, %cst_17 {dimension_numbers = #tpu.dot_dimension_numbers<[1], [0], [0], [1], [0, 0, 1, 1], [], []>} : vector<8x128xbf16>, vector<128x128xbf16>, vector<8x128xf32> -> vector<8x128xf32>
    %33 = vector.extract_strided_slice %2 {offsets = [3, 0], sizes = [1, 128], strides = [1, 1]} : vector<4x128xf32> to vector<1x128xf32>
    %34 = vector.broadcast %33 : vector<1x128xf32> to vector<8x128xf32>
    %35 = arith.addf %32, %34 : vector<8x128xf32>
    %36 = tpu.iota {dimensions = array<i32: 1>} : vector<8x128xi32>
    %c4_i32 = arith.constant 4 : i32
    %37 = vector.broadcast %c4_i32 : i32 to vector<8x128xi32>
    %38 = arith.cmpi slt, %36, %37 : vector<8x128xi32>
    %cst_18 = arith.constant -1.000000e+30 : f32
    %39 = vector.broadcast %cst_18 : f32 to vector<8x128xf32>
    %40 = arith.select %38, %35, %39 : vector<8x128xi1>, vector<8x128xf32>
    %cst_19 = arith.constant dense<0xFF800000> : vector<8xf32>
    %41 = vector.multi_reduction <maximumf>, %40, %cst_19 [1] : vector<8x128xf32> to vector<8xf32>
    %42 = vector.shape_cast %41 : vector<8xf32> to vector<8x1xf32>
    %43 = vector.broadcast %42 : vector<8x1xf32> to vector<8x128xf32>
    %44 = arith.subf %40, %43 : vector<8x128xf32>
    %45 = math.exp %44 : vector<8x128xf32>
    %cst_20 = arith.constant dense<0.000000e+00> : vector<8xf32>
    %46 = vector.multi_reduction <add>, %45, %cst_20 [1] : vector<8x128xf32> to vector<8xf32>
    %47 = vector.shape_cast %46 : vector<8xf32> to vector<8x1xf32>
    %48 = vector.broadcast %47 : vector<8x1xf32> to vector<8x128xf32>
    %49 = arith.divf %45, %48 : vector<8x128xf32>
    %c0_21 = arith.constant 0 : index
    %c0_22 = arith.constant 0 : index
    %50 = vector.load %arg4[%c0_21, %c0_22] : memref<8x128xf32, #tpu.memory_space<vmem>>, vector<8x128xf32>
    tpu.vector_store %arg4[%c0_21, %c0_22], %49 {strides = array<i32>} : memref<8x128xf32, #tpu.memory_space<vmem>>, vector<8x128xf32>,
    return
  }
  func.func @transform_0(%arg0: i32) -> (i32, i32) {
    %c0_i32 = arith.constant 0 : i32
    %c0_i32_0 = arith.constant 0 : i32
    return %arg0, %c0_i32 : i32, i32
  }
  func.func @transform_1(%arg0: i32) -> (i32, i32, i32) {
    %c0_i32 = arith.constant 0 : i32
    %c0_i32_0 = arith.constant 0 : i32
    %c0_i32_1 = arith.constant 0 : i32
    %c0_i32_2 = arith.constant 0 : i32
    return %c0_i32, %c0_i32_0, %c0_i32_1 : i32, i32, i32
  }
  func.func @transform_2(%arg0: i32) -> (i32, i32) {
    %c0_i32 = arith.constant 0 : i32
    %c0_i32_0 = arith.constant 0 : i32
    %c0_i32_1 = arith.constant 0 : i32
    return %c0_i32, %c0_i32_0 : i32, i32
  }
  func.func @transform_3(%arg0: i32) -> (i32, i32) {
    %c0_i32 = arith.constant 0 : i32
    %c0_i32_0 = arith.constant 0 : i32
    return %arg0, %c0_i32 : i32, i32
  }
}

</mosaic_0001>

<bundles_post_ra>
// kernel: _dqn_forward_impl.1
= control target key start
LH: loop header
LB: loop body
LE: loop exit
PB: predicated region body
PF: predicated region fallthrough
CT: control target
= control target key end

     0   :  { %8 = vsyncpa [#allocation3], 0  ;;  %s759_s0 = inlined_call_operand.hbm [shape: f32[8,16], index: 0, kind: input, shape index: {}]   ;;  %s760_s1 = inlined_call_operand.hbm [shape: bf16[4,128,128], index: 1, kind: input, shape index: {}]   ;;  %s761_s2 = inlined_call_operand.vmem [shape: f32[4,128], index: 2, kind: input, shape index: {}]   ;;  %s762_s3 = inlined_call_operand.vmem [shape: f32[8,128], index: 3, kind: output, shape index: {}]  }
   0x1   :  { %9 = vsyncpa [#allocation5], 0  ;;  %s657_s12 = smov [#allocation2]   ;;  %s658_s14 = smov [#allocation4]  }
   0x2   :  { %s16_s13 = sshll.u32 %s657_s12, 4  ;;  %s25_s15 = sshll.u32 %s658_s14, 4  ;;  %s17_s13 = int_to_ptr.vmem [resolvable:$true] %s16_s13  ;;  %s683_s15 = int_to_ptr.vmem [resolvable:$true] %s25_s15 }
   0x3   :  { %s609_s18 = scalar_lea.hbm %s759_s0, 128 }
   0x4   :  { %p610_p0 = scmp.ne.s32.totalorder %s759_s0, %s609_s18  ;;  %p613_p1 = scmp.lt.u32.totalorder %s609_s18, %s759_s0 }
   0x6   :  { %p615_p2 = pnand %p613_p1, %p610_p0 }
   0x8   :  { %618 = shalt.err (!%p615_p2)
}
   0x9   :  { %s619_s23 = scalar_lea.vmem %s17_s13, 128  ;;  %p624_p4 = scmp.lt.s32.totalorder %s17_s13, %s17_s13 }
   0xa   :  { %p620_p3 = scmp.ne.s32.totalorder %s17_s13, %s619_s23  ;;  %p625_p5 = scmp.lt.s32.totalorder %s619_s23, %s619_s23 }
   0xc   :  { %p626_p6 = por %p625_p5, %p624_p4 }
   0xe   :  { %p627_p7 = pnand %p626_p6, %p620_p3 }
  0x10   :  { %630 = shalt.err (!%p627_p7)
}
  0x11   :  { %19 = dma.hbm_to_vmem [thread:$0]  %s759_s0, 128, %s17_s13, [#allocation3]  }
  0x12   :  { %s631_s28 = scalar_lea.hbm %s760_s1, 4096 }
  0x13   :  { %p632_p8 = scmp.ne.s32.totalorder %s760_s1, %s631_s28  ;;  %p635_p9 = scmp.lt.u32.totalorder %s631_s28, %s760_s1 }
  0x15   :  { %p637_p10 = pnand %p635_p9, %p632_p8 }
  0x17   :  { %640 = shalt.err (!%p637_p10)
}
  0x18   :  { %s641_s6 = scalar_lea.vmem %s683_s15, 4096  ;;  %p646_p12 = scmp.lt.s32.totalorder %s683_s15, %s683_s15 }
  0x19   :  { %p642_p11 = scmp.ne.s32.totalorder %s683_s15, %s641_s6  ;;  %p647_p13 = scmp.lt.s32.totalorder %s641_s6, %s641_s6 }
  0x1b   :  { %p648_p0 = por %p647_p13, %p646_p12 }
  0x1d   :  { %p649_p1 = pnand %p648_p0, %p642_p11 }
  0x1f   :  { %652 = shalt.err (!%p649_p1)
}
  0x20   :  { %s659_s0 = smov 64   ;;  %s660_s7 = smov 4  }
  0x21   :  { %31 = dma.hbm_to_vmem [thread:$0]  %s760_s1, 4096, %s683_s15, [#allocation5], %s659_s0, %s659_s0, %s660_s7  }
  0x22   :  { %653 = dma.done.wait [#allocation3], 128  }
  0x23   :  { %654 = vsyncadd [#allocation3], 4294967168 }
  0x24   :  { %655 = dma.done.wait [#allocation5], 4096  }
  0x25   :  { %656 = vsyncadd [#allocation5], 4294963200  ;;  %v661_v0 = vmov 0.0   ;;  %vm662_vm0 = vmmov 0   ;;  %v580_v1 = vld [vmem:[#allocation4] sm:$0xff]   ;;  %v41_v2 = vld [vmem:[#allocation2] sm:$0xff]  ;;  %v46_v18 = vlaneseq }
  0x26   :  { %508 = vmatprep.subr.bf16.mxu0 %v661_v0  ;;  %510 = vmatprep.mubr.msk.bf16.mxu0 %vm662_vm0, %v661_v0  ;;  %v42_v3 = vpack.c.bf16 %v41_v2, %v41_v2  ;;  %vm56_vm1 = vcmask 130048   ;;  %v581_v4 = vld [vmem:[#allocation4 + $0x40] sm:$0xff]   ;;  %v582_v5 = vld [vmem:[#allocation4 + $0x48] sm:$0xff]   ;;  %v583_v6 = vld [vmem:[#allocation4 + $0x50] sm:$0xff]  }
  0x27   :  { %514 = vmatprep.subr.bf16.mxu1 %v661_v0  ;;  %530 = vmatprep.mubr.msk.bf16.mxu1 %vm662_vm0, %v661_v0  ;;  %v584_v7 = vld [vmem:[#allocation4 + $0x58] sm:$0xff]   ;;  %v585_v8 = vld [vmem:[#allocation4 + $0x60] sm:$0xff]   ;;  %v586_v9 = vld [vmem:[#allocation4 + $0x68] sm:$0xff]   ;;  %v737_v19 = vshrl.u32 %v46_v18, 7  ;;  %v434_v59 = vand.u32 127, %v46_v18 }
  0x28   :  { %509 = vmatpush3.bf16.msra.mxu0 %v580_v1  ;;  %515 = vmatpush3.bf16.msra.mxu1 %v581_v4  ;;  %v587_v10 = vld [vmem:[#allocation4 + $0x70] sm:$0xff]   ;;  %v588_v11 = vld [vmem:[#allocation4 + $0x78] sm:$0xff]   ;;  %v589_v12 = vld [vmem:[#allocation4 + $0x80] sm:$0xff]  }
  0x29   :  { %534 = vmatprep.subr.bf16.mxu0 %v661_v0  ;;  %516 = vmatprep.subr.bf16.mxu1 %v661_v0  ;;  %v590_v13 = vld [vmem:[#allocation4 + $0x88] sm:$0xff]   ;;  %v591_v14 = vld [vmem:[#allocation4 + $0x90] sm:$0xff]   ;;  %v592_v15 = vld [vmem:[#allocation4 + $0x98] sm:$0xff]   ;;  %v48_v20 = vsub.s32 0, %v737_v19  ;;  %v121_v38 = vsub.s32 1, %v737_v19  ;;  %v232_v49 = vsub.s32 2, %v737_v19 }
  0x2a   :  { %v593_v16 = vld [vmem:[#allocation4 + $0xa0] sm:$0xff]   ;;  %v594_v17 = vld [vmem:[#allocation4 + $0xa8] sm:$0xff]   ;;  %v43_v21 = vld [vmem:[%s761_s2] sm:$0xf]  ;;  %v343_v58 = vsub.s32 3, %v737_v19  ;;  %vm435_vm2 = vcmp.lt.s32.totalorder %v434_v59, 4 }
  0x2b   :  { %511 = vmatmul.mubr.msk.bf16.vlgmr.msra.gmra.mrb[0].mxu0 %vm56_vm1, %v42_v3  ;;  %v49_v22 = vrot.slane %v43_v21, %v48_v20  ;;  %v595_v30 = vld [vmem:[#allocation4 + $0xb0] sm:$0xff]   ;;  %v596_v31 = vld [vmem:[#allocation4 + $0xb8] sm:$0xff]   ;;  %v597_v32 = vld [vmem:[#allocation4 + $0xc0] sm:$0xff]   ;;  %v122_v39 = vrot.slane %v43_v21, %v121_v38  ;;  %v233_v50 = vrot.slane %v43_v21, %v232_v49 }
  0x2c   :  { %550 = vmatprep.mubr.msk.bf16.mxu0 %vm662_vm0, %v661_v0  ;;  %517 = vmatpush3.bf16.msra.mxu1 %v582_v5  ;;  %v598_v33 = vld [vmem:[#allocation4 + $0xc8] sm:$0xff]   ;;  %v599_v34 = vld [vmem:[#allocation4 + $0xd0] sm:$0xff]   ;;  %v600_v35 = vld [vmem:[#allocation4 + $0xd8] sm:$0xff]   ;;  %v344_v60 = vrot.slane %v43_v21, %v343_v58 }
  0x2d   :  { %518 = vmatprep.subr.bf16.mxu1 %v661_v0  ;;  %535 = vmatpush3.bf16.msra.mxu0 %v589_v12  ;;  %v601_v36 = vld [vmem:[#allocation4 + $0xe0] sm:$0xff]   ;;  %v602_v37 = vld [vmem:[#allocation4 + $0xe8] sm:$0xff]   ;;  %v603_v47 = vld [vmem:[#allocation4 + $0xf0] sm:$0xff]  }
  0x2e   :  { %536 = vmatprep.subr.bf16.mxu0 %v661_v0  ;;  %v604_v48 = vld [vmem:[#allocation4 + $0xf8] sm:$0xff]  }
  0x30   :  { %519 = vmatpush3.bf16.msra.mxu1 %v583_v6 }
  0x31   :  { %520 = vmatprep.subr.bf16.mxu1 %v661_v0  ;;  %537 = vmatpush3.bf16.msra.mxu0 %v590_v13 }
  0x32   :  { %538 = vmatprep.subr.bf16.mxu0 %v661_v0 }
  0x34   :  { %521 = vmatpush3.bf16.msra.mxu1 %v584_v7 }
  0x35   :  { %522 = vmatprep.subr.bf16.mxu1 %v661_v0  ;;  %539 = vmatpush3.bf16.msra.mxu0 %v591_v14 }
  0x36   :  { %540 = vmatprep.subr.bf16.mxu0 %v661_v0 }
  0x38   :  { %523 = vmatpush3.bf16.msra.mxu1 %v585_v8 }
  0x39   :  { %524 = vmatprep.subr.bf16.mxu1 %v661_v0  ;;  %541 = vmatpush3.bf16.msra.mxu0 %v592_v15 }
  0x3a   :  { %542 = vmatprep.subr.bf16.mxu0 %v661_v0 }
  0x3c   :  { %525 = vmatpush3.bf16.msra.mxu1 %v586_v9 }
  0x3d   :  { %526 = vmatprep.subr.bf16.mxu1 %v661_v0  ;;  %543 = vmatpush3.bf16.msra.mxu0 %v593_v16 }
  0x3e   :  { %544 = vmatprep.subr.bf16.mxu0 %v661_v0 }
  0x40   :  { %527 = vmatpush3.bf16.msra.mxu1 %v587_v10 }
  0x41   :  { %528 = vmatprep.subr.bf16.mxu1 %v661_v0  ;;  %545 = vmatpush3.bf16.msra.mxu0 %v594_v17 }
  0x42   :  { %546 = vmatprep.subr.bf16.mxu0 %v661_v0 }
  0x44   :  { %529 = vmatpush3.bf16.msra.mxu1 %v588_v11 }
  0x45   :  { %554 = vmatprep.subr.bf16.mxu1 %v661_v0  ;;  %547 = vmatpush3.bf16.msra.mxu0 %v595_v30 }
  0x46   :  { %548 = vmatprep.subr.bf16.mxu0 %v661_v0 }
  0x49   :  { %549 = vmatpush3.bf16.msra.mxu0 %v596_v31 }
  0xfe   :  { %v94_v23 = vpop.f32.mrb[0].mxu0 }
  0xff   :  { %v95_v24 = vadd.f32 %v94_v23, %v49_v22  ;;  %v512_v25 = vpop.f32.mrb[1].mxu0 }
 0x100   :  { %v97_v26 = vpop.f32.mrb[2].mxu0 }
 0x101   :  { %v100_v27 = vmax.f32 %v95_v24, 0.0  ;;  %v513_v28 = vpop.f32.mrb[3].mxu0 }
 0x103   :  { %v101_v29 = vpack.c.bf16 %v100_v27, %v100_v27 }
 0x105   :  { %531 = vmatmul.mubr.bf16.vlgmr.msra.gmra.mrb[0].mxu1 %v101_v29 }
 0x106   :  { %570 = vmatprep.mubr.msk.bf16.mxu1 %vm662_vm0, %v661_v0  ;;  %555 = vmatpush3.bf16.msra.mxu1 %v597_v32 }
 0x107   :  { %556 = vmatprep.subr.bf16.mxu1 %v661_v0 }
 0x10a   :  { %557 = vmatpush3.bf16.msra.mxu1 %v598_v33 }
 0x10b   :  { %558 = vmatprep.subr.bf16.mxu1 %v661_v0 }
 0x10e   :  { %559 = vmatpush3.bf16.msra.mxu1 %v599_v34 }
 0x10f   :  { %560 = vmatprep.subr.bf16.mxu1 %v661_v0 }
 0x112   :  { %561 = vmatpush3.bf16.msra.mxu1 %v600_v35 }
 0x113   :  { %562 = vmatprep.subr.bf16.mxu1 %v661_v0 }
 0x116   :  { %563 = vmatpush3.bf16.msra.mxu1 %v601_v36 }
 0x117   :  { %564 = vmatprep.subr.bf16.mxu1 %v661_v0 }
 0x11a   :  { %565 = vmatpush3.bf16.msra.mxu1 %v602_v37 }
 0x11b   :  { %566 = vmatprep.subr.bf16.mxu1 %v661_v0 }
 0x11e   :  { %567 = vmatpush3.bf16.msra.mxu1 %v603_v47 }
 0x11f   :  { %568 = vmatprep.subr.bf16.mxu1 %v661_v0 }
 0x122   :  { %569 = vmatpush3.bf16.msra.mxu1 %v604_v48 }
 0x1d8   :  { %v205_v40 = vpop.f32.mrb[0].mxu1 }
 0x1d9   :  { %v206_v41 = vadd.f32 %v205_v40, %v122_v39  ;;  %v532_v42 = vpop.f32.mrb[1].mxu1 }
 0x1da   :  { %v208_v43 = vpop.f32.mrb[2].mxu1 }
 0x1db   :  { %v211_v44 = vmax.f32 %v206_v41, 0.0  ;;  %v533_v45 = vpop.f32.mrb[3].mxu1 }
 0x1dd   :  { %v212_v46 = vpack.c.bf16 %v211_v44, %v211_v44 }
 0x1df   :  { %551 = vmatmul.mubr.bf16.vlgmr.msra.gmra.mrb[4].mxu0 %v212_v46 }
 0x2b2   :  { %v316_v51 = vpop.f32.mrb[4].mxu0 }
 0x2b3   :  { %v317_v52 = vadd.f32 %v316_v51, %v233_v50  ;;  %v552_v53 = vpop.f32.mrb[5].mxu0 }
 0x2b4   :  { %v319_v54 = vpop.f32.mrb[6].mxu0 }
 0x2b5   :  { %v322_v55 = vmax.f32 %v317_v52, 0.0  ;;  %v553_v56 = vpop.f32.mrb[7].mxu0 }
 0x2b7   :  { %v323_v57 = vpack.c.bf16 %v322_v55, %v322_v55 }
 0x2b9   :  { %571 = vmatmul.mubr.bf16.vlgmr.msra.gmra.mrb[4].mxu1 %v323_v57 }
 0x38c   :  { %v427_v61 = vpop.f32.mrb[4].mxu1 }
 0x38d   :  { %v428_v62 = vadd.f32 %v427_v61, %v344_v60  ;;  %v572_v63 = vpop.f32.mrb[5].mxu1 }
 0x38e   :  { %v430_v0 = vpop.f32.mrb[6].mxu1 }
 0x38f   :  { %v573_v1 = vpop.f32.mrb[7].mxu1  ;;  %v436_v2 = vsel %vm435_vm2, %v428_v62, -1e+30 }
 0x390   :  { %437 = vmax.xlane.f32.xlu0 %v436_v2 }
 0x41d   :  { %v438_v3 = vpop.xlane.xlu0 %437 }
 0x41e   :  { %v439_v4 = vsub.f32 %v436_v2, %v438_v3 }
 0x420   :  { %v440_v5 = vmul.f32 1.442695, %v439_v4 }
 0x422   :  { %605 = vpow2.f32 %v440_v5 }
 0x42c   :  { %v606_v6 = vpop.eup %605 }
 0x42d   :  { %442 = vadd.xlane.f32.xlu0 %v606_v6 }
 0x4ba   :  { %v443_v7 = vpop.xlane.xlu0 %442 }
 0x4bb   :  { %607 = vrcp.f32 %v443_v7 }
 0x4c5   :  { %v608_v8 = vpop.eup %607 }
 0x4c6   :  { %v445_v9 = vmul.f32 %v608_v8, %v606_v6 }
 0x4c8   :  { %446 = vst [vmem:[%s762_s3] sm:$0xff] %v445_v9 }
 0x4c9   :  { %451 = vsyncpa [#allocation3], 1 }
 0x4ca   :  { %452 = vsyncpa [#allocation5], 1 }

</bundles_post_ra>
